<compile_context>
chip_gen: v7x
topology: tpu7x:2x2x1
jax: 0.10.0
libtpu: 0.0.40
codegen_flags: <defaults>
</compile_context>

<pallas_src>
import functools

import jax
import jax.numpy as jnp
from jax import lax
from jax.experimental import pallas as pl
from jax.experimental.pallas import tpu as pltpu

LANES = 128                     # vreg lane width
SUBLANES = 8                    # f32 vreg sublane count
TARGET_BLOCK_BYTES = 2 << 20    # ~2 MiB per input block (review: 1-2 MiB knee)


def _sublane_multiple(dtype):
    """Packed-sublane multiple for a dtype: 8 (32-bit), 16 (16-bit), 32 (8-bit)."""
    itemsize = jnp.dtype(dtype).itemsize
    return SUBLANES * max(1, 4 // itemsize)


def _num_tc_splits():
    """Best-effort TensorCore count (1 on v5e/v6e, 2 on multi-TC chips)."""
    try:
        info = pltpu.get_tpu_info()
        for name in ("num_cores", "core_count", "num_tensorcores",
                     "tensorcore_count", "num_tensor_cores"):
            v = getattr(info, name, None)
            if isinstance(v, int) and v >= 1:
                return min(int(v), 2)
    except Exception:
        pass
    # Fallback: a size-2 "parallel" axis is harmless (sequential) on 1-TC chips.
    return 2


def _wbce_elem(x, t, pos_weight):
    """Elementwise weighted BCE-with-logits (stable form), f32."""
    x = x.astype(jnp.float32)
    t = t.astype(jnp.float32)
    loss = jnp.maximum(x, 0.0) - x * t + jnp.log1p(jnp.exp(-jnp.abs(x)))
    if pos_weight == 1.0:
        return loss
    # weights*loss = (t*pw + (1-t))*loss = loss + (pw-1)*(t*loss)
    return loss + jnp.float32(pos_weight - 1.0) * (t * loss)


def _wbce_kernel(x_ref, t_ref, out_ref, *, pos_weight, block_rows, steps,
                 last_block, rows_in_last, exact):
    c = pl.program_id(0)   # "parallel" core-split axis
    i = pl.program_id(1)   # "arbitrary" reduction axis

    @pl.when(i == 0)
    def _():
        out_ref[...] = jnp.zeros_like(out_ref)

    x = x_ref[...].astype(jnp.float32)
    t = t_ref[...].astype(jnp.float32)

    # binary_cross_entropy_with_logits, reduction='none' (stable form).
    # Exact formula kept on all generations; EUP cost is exp + log1p.
    loss = jnp.maximum(x, 0.0) - x * t + jnp.log1p(jnp.exp(-jnp.abs(x)))
    if pos_weight == 1.0:
        wl = loss
    else:
        wl = loss + jnp.float32(pos_weight - 1.0) * (t * loss)

    def _fold(v):
        # Pure-VALU partial reduction to one (8, 128) vreg (no per-step XLU).
        return jnp.sum(v.reshape(block_rows // SUBLANES, SUBLANES, LANES),
                       axis=0)[None]

    if exact:
        # Every block is full and every grid point maps to a distinct block.
        out_ref[...] += _fold(wl)
    else:
        b = c * steps + i  # global block index (un-clamped)

        @pl.when(b < last_block)
        def _():
            out_ref[...] += _fold(wl)

        @pl.when(b == last_block)
        def _():
            # Only the final block can be partial: mask the overhanging rows
            # (garbage from the overhanging DMA is forced to exactly 0,
            # including NaN/Inf, since where() selects the 0 branch).
            row_ids = lax.broadcasted_iota(jnp.int32, (block_rows, LANES), 0)
            out_ref[...] += _fold(jnp.where(row_ids < rows_in_last, wl, 0.0))
        # b > last_block (duplicate, index-clamped block): contributes nothing.


def weighted_bce_loss(inputs, targets, pos_weight):
    """mean((targets*pos_weight + (1-targets)) * BCEWithLogits(inputs, targets))."""
    assert inputs.shape == targets.shape
    pos_weight = float(pos_weight)   # fixed module parameter -> static constant
    n = inputs.size

    flat_x = inputs.reshape(-1)
    flat_t = targets.reshape(-1)

    sm = max(_sublane_multiple(inputs.dtype), _sublane_multiple(targets.dtype))
    itemsize = max(jnp.dtype(inputs.dtype).itemsize,
                   jnp.dtype(targets.dtype).itemsize)

    rows = n // LANES
    rem = n - rows * LANES

    inv_n = jnp.float32(1.0 / n)   # 1/N computed in host double precision

    if rows < sm:
        # Too small for a useful kernel launch: pure-jnp fallback (< sm*128 elems).
        return jnp.sum(_wbce_elem(flat_x, flat_t, pos_weight),
                       dtype=jnp.float32) * inv_n

    n_main = rows * LANES
    if rem:
        # Tiny (<128-element) ragged tail computed in plain jnp — avoids the
        # full-array pad round trip.  The prefix slice below may cost one copy
        # in this (uncommon) unaligned case; allow_input_fusion could remove it.
        tail = jnp.sum(_wbce_elem(flat_x[n_main:], flat_t[n_main:], pos_weight),
                       dtype=jnp.float32)
        x2d = flat_x[:n_main].reshape(rows, LANES)
        t2d = flat_t[:n_main].reshape(rows, LANES)
    else:
        tail = None
        x2d = flat_x.reshape(rows, LANES)   # free layout bitcast, no HBM copy
        t2d = flat_t.reshape(rows, LANES)

    # Block sizing: target ~TARGET_BLOCK_BYTES per input block, rounded to the
    # dtype's packed-sublane multiple, never exceeding the array (so only the
    # final block can overhang).  Worst case VMEM: 2 inputs x 2 bufs x 2 MiB
    # = 8 MiB < 16 MiB (v5e scoped) < 32 MiB (v6e/v7x scoped).
    target_rows = max(sm, (TARGET_BLOCK_BYTES // (LANES * itemsize)) // sm * sm)
    block_rows = min(target_rows, (rows // sm) * sm)

    total_blocks = pl.cdiv(rows, block_rows)
    nsplit = min(_num_tc_splits(), total_blocks)
    steps = pl.cdiv(total_blocks, nsplit)

    last_block = total_blocks - 1
    rows_in_last = rows - last_block * block_rows
    exact = (rows_in_last == block_rows) and (nsplit * steps == total_blocks)

    if nsplit * steps == total_blocks:
        def in_index(c, i):
            return (c * steps + i, 0)
    else:
        # Surplus grid blocks (< nsplit) re-read the last block (valid DMA)
        # and are gated off inside the kernel.
        def in_index(c, i):
            return (jnp.minimum(c * steps + i, last_block), 0)

    kernel = functools.partial(
        _wbce_kernel,
        pos_weight=pos_weight,
        block_rows=block_rows,
        steps=steps,
        last_block=last_block,
        rows_in_last=rows_in_last,
        exact=exact,
    )

    partials = pl.pallas_call(
        kernel,
        out_shape=jax.ShapeDtypeStruct((nsplit, SUBLANES, LANES), jnp.float32),
        grid_spec=pltpu.PrefetchScalarGridSpec(
            num_scalar_prefetch=0,
            grid=(nsplit, steps),
            in_specs=[
                pl.BlockSpec((block_rows, LANES), in_index),
                pl.BlockSpec((block_rows, LANES), in_index),
            ],
            out_specs=pl.BlockSpec((1, SUBLANES, LANES), lambda c, i: (c, 0, 0)),
        ),
        compiler_params=pltpu.CompilerParams(
            dimension_semantics=("parallel", "arbitrary"),
        ),
    )(x2d, t2d)

    # Tiny epilogue: one cross-lane reduce over nsplit*8*128 f32 + 1/N scale.
    total = jnp.sum(partials, dtype=jnp.float32)
    if tail is not None:
        total = total + tail
    return total * inv_n


def _reference(inputs, targets, pos_weight):
    x = inputs.astype(jnp.float32)
    t = targets.astype(jnp.float32)
    loss = jnp.maximum(x, 0.0) - x * t + jnp.log1p(jnp.exp(-jnp.abs(x)))
    w = t * pos_weight + (1.0 - t)
    return jnp.mean(w * loss)


if __name__ == "__main__":
    key = jax.random.PRNGKey(0)
    k1, k2, k3, k4 = jax.random.split(key, 4)

    pos_weight = 3.0  # deterministic "parameter" from __init__

    # Shapes consistent with a classification head over NCHW-like logits
    # (128-aligned: zero-copy reshape path, single full block).
    B, C, H, W = 2, 4, 16, 16
    inputs = jax.random.normal(k1, (B, C, H, W), dtype=jnp.float32)
    targets = (jax.random.uniform(k2, (B, C, H, W)) > 0.5).astype(jnp.float32)

    out = jax.block_until_ready(weighted_bce_loss(inputs, targets, pos_weight))
    ref = _reference(inputs, targets, pos_weight)
    assert jnp.allclose(out, ref, rtol=1e-5, atol=1e-5), (out, ref)

    # Unaligned shape: exercises the jnp tail + masked partial last block.
    x2 = jax.random.normal(k3, (3, 5, 7, 11), dtype=jnp.float32)      # 1155 elems
    t2 = (jax.random.uniform(k4, (3, 5, 7, 11)) > 0.5).astype(jnp.float32)
    out2 = jax.block_until_ready(weighted_bce_loss(x2, t2, pos_weight))
    ref2 = _reference(x2, t2, pos_weight)
    assert jnp.allclose(out2, ref2, rtol=1e-5, atol=1e-5), (out2, ref2)

    print("KERNEL_OK")
</pallas_src>

<mosaic_0001>
module attributes {stable_mosaic.version = 11 : i64} {
  func.func @_wbce_kernel(%arg0: i32, %arg1: i32, %arg2: memref<16x128xf32, #tpu.memory_space<vmem>>, %arg3: memref<16x128xf32, #tpu.memory_space<vmem>>, %arg4: memref<1x8x128xf32, #tpu.memory_space<vmem>>) attributes {dimension_semantics = [#tpu.dimension_semantics<parallel>, #tpu.dimension_semantics<arbitrary>], iteration_bounds = array<i64: 1, 1>, scalar_prefetch = 0 : i64, scratch_operands = 0 : i64, tpu.core_type = #tpu.core_type<tc>, window_params = [{transform_indices = @transform_0, window_bounds = array<i64: 16, 128>}, {transform_indices = @transform_1, window_bounds = array<i64: 16, 128>}, {transform_indices = @transform_2, window_bounds = array<i64: 1, 8, 128>}]} {
    %c0_i32 = arith.constant 0 : i32
    %0 = arith.cmpi eq, %arg1, %c0_i32 : i32
    %1 = arith.extui %0 : i1 to i32
    %c0_i32_0 = arith.constant 0 : i32
    %2 = arith.cmpi ne, %1, %c0_i32_0 : i32
    scf.if %2 {
      %cst_13 = arith.constant 0.000000e+00 : f32
      %25 = vector.broadcast %cst_13 : f32 to vector<1x8x128xf32>
      %c0_14 = arith.constant 0 : index
      %c0_15 = arith.constant 0 : index
      %c0_16 = arith.constant 0 : index
      %26 = vector.load %arg4[%c0_14, %c0_15, %c0_16] : memref<1x8x128xf32, #tpu.memory_space<vmem>>, vector<1x8x128xf32>
      tpu.vector_store %arg4[%c0_14, %c0_15, %c0_16], %25 {strides = array<i32>} : memref<1x8x128xf32, #tpu.memory_space<vmem>>, vector<1x8x128xf32>,
    } else {
    }
    %c0 = arith.constant 0 : index
    %c0_1 = arith.constant 0 : index
    %3 = vector.load %arg2[%c0, %c0_1] : memref<16x128xf32, #tpu.memory_space<vmem>>, vector<16x128xf32>
    %c0_2 = arith.constant 0 : index
    %c0_3 = arith.constant 0 : index
    %4 = vector.load %arg3[%c0_2, %c0_3] : memref<16x128xf32, #tpu.memory_space<vmem>>, vector<16x128xf32>
    %cst = arith.constant 0.000000e+00 : f32
    %5 = vector.broadcast %cst : f32 to vector<16x128xf32>
    %6 = arith.maximumf %3, %5 : vector<16x128xf32>
    %7 = arith.mulf %3, %4 : vector<16x128xf32>
    %8 = arith.subf %6, %7 : vector<16x128xf32>
    %9 = math.absf %3 : vector<16x128xf32>
    %cst_4 = arith.constant 0.000000e+00 : f32
    %10 = vector.broadcast %cst_4 : f32 to vector<16x128xf32>
    %11 = arith.subf %10, %9 : vector<16x128xf32>
    %12 = math.exp %11 : vector<16x128xf32>
    %13 = math.log1p %12 : vector<16x128xf32>
    %14 = arith.addf %8, %13 : vector<16x128xf32>
    %15 = arith.mulf %4, %14 : vector<16x128xf32>
    %cst_5 = arith.constant 2.000000e+00 : f32
    %16 = vector.broadcast %cst_5 : f32 to vector<16x128xf32>
    %17 = arith.mulf %16, %15 : vector<16x128xf32>
    %18 = arith.addf %14, %17 : vector<16x128xf32>
    %c0_6 = arith.constant 0 : index
    %c0_7 = arith.constant 0 : index
    %c0_8 = arith.constant 0 : index
    %19 = vector.load %arg4[%c0_6, %c0_7, %c0_8] : memref<1x8x128xf32, #tpu.memory_space<vmem>>, vector<1x8x128xf32>
    %20 = vector.shape_cast %18 : vector<16x128xf32> to vector<2x8x128xf32>
    %cst_9 = arith.constant dense<0.000000e+00> : vector<8x128xf32>
    %21 = vector.multi_reduction <add>, %20, %cst_9 [0] : vector<2x8x128xf32> to vector<8x128xf32>
    %22 = vector.shape_cast %21 : vector<8x128xf32> to vector<1x8x128xf32>
    %23 = arith.addf %19, %22 : vector<1x8x128xf32>
    %c0_10 = arith.constant 0 : index
    %c0_11 = arith.constant 0 : index
    %c0_12 = arith.constant 0 : index
    %24 = vector.load %arg4[%c0_10, %c0_11, %c0_12] : memref<1x8x128xf32, #tpu.memory_space<vmem>>, vector<1x8x128xf32>
    tpu.vector_store %arg4[%c0_10, %c0_11, %c0_12], %23 {strides = array<i32>} : memref<1x8x128xf32, #tpu.memory_space<vmem>>, vector<1x8x128xf32>,
    return
  }
  func.func @transform_0(%arg0: i32, %arg1: i32) -> (i32, i32) {
    %c1_i32 = arith.constant 1 : i32
    %0 = arith.muli %arg0, %c1_i32 : i32
    %1 = arith.addi %0, %arg1 : i32
    %c0_i32 = arith.constant 0 : i32
    %c0_i32_0 = arith.constant 0 : i32
    return %1, %c0_i32 : i32, i32
  }
  func.func @transform_1(%arg0: i32, %arg1: i32) -> (i32, i32) {
    %c1_i32 = arith.constant 1 : i32
    %0 = arith.muli %arg0, %c1_i32 : i32
    %1 = arith.addi %0, %arg1 : i32
    %c0_i32 = arith.constant 0 : i32
    %c0_i32_0 = arith.constant 0 : i32
    return %1, %c0_i32 : i32, i32
  }
  func.func @transform_2(%arg0: i32, %arg1: i32) -> (i32, i32, i32) {
    %c0_i32 = arith.constant 0 : i32
    %c0_i32_0 = arith.constant 0 : i32
    %c0_i32_1 = arith.constant 0 : i32
    return %arg0, %c0_i32, %c0_i32_0 : i32, i32, i32
  }
}

</mosaic_0001>

<bundles_post_ra>
// kernel: tpu_custom_call.1
= control target key start
LH: loop header
LB: loop body
LE: loop exit
PB: predicated region body
PF: predicated region fallthrough
CT: control target
= control target key end

     0   :  { %7 = vsyncpa [#allocation3], 0  ;;  %s263_s0 = inlined_call_operand.hbm [shape: f32[16,128], index: 0, kind: input, shape index: {}]   ;;  %s264_s1 = inlined_call_operand.hbm [shape: f32[16,128], index: 1, kind: input, shape index: {}]   ;;  %s265_s2 = inlined_call_operand.hbm [shape: f32[1,8,128], index: 2, kind: output, shape index: {}]  }
   0x1   :  { %8 = vsyncpa [#allocation6], 0 }
   0x2   :  { %9 = vsyncpa [#allocation4], 0  ;;  %s207_s9 = smov [#allocation2]   ;;  %s135_s13 = scalar_lea.hbm %s263_s0, 256 }
   0x3   :  { %s19_s10 = sshll.u32 %s207_s9, 4  ;;  %p136_p0 = scmp.ne.s32.totalorder %s263_s0, %s135_s13  ;;  %s20_s10 = int_to_ptr.vmem [resolvable:$true] %s19_s10 }
   0x4   :  { %p139_p1 = scmp.lt.u32.totalorder %s135_s13, %s263_s0 }
   0x6   :  { %p141_p2 = pnand %p139_p1, %p136_p0 }
   0x8   :  { %144 = shalt.err (!%p141_p2)
}
   0x9   :  { %s145_s18 = scalar_lea.vmem %s20_s10, 256  ;;  %p150_p4 = scmp.lt.s32.totalorder %s20_s10, %s20_s10 }
   0xa   :  { %p146_p3 = scmp.ne.s32.totalorder %s20_s10, %s145_s18  ;;  %p151_p5 = scmp.lt.s32.totalorder %s145_s18, %s145_s18 }
   0xc   :  { %p152_p6 = por %p151_p5, %p150_p4 }
   0xe   :  { %p153_p7 = pnand %p152_p6, %p146_p3 }
  0x10   :  { %156 = shalt.err (!%p153_p7)
}
  0x11   :  { %s208_s19 = smov 128   ;;  %s209_s20 = smov 8  }
  0x12   :  { %25 = dma.hbm_to_vmem [thread:$0]  %s263_s0, 256, %s20_s10, [#allocation3], %s208_s19, %s208_s19, %s209_s20  }
  0x13   :  { %s210_s23 = smov [#allocation5]   ;;  %s157_s27 = scalar_lea.hbm %s264_s1, 256 }
  0x14   :  { %s35_s24 = sshll.u32 %s210_s23, 4  ;;  %p158_p8 = scmp.ne.s32.totalorder %s264_s1, %s157_s27  ;;  %s36_s24 = int_to_ptr.vmem [resolvable:$true] %s35_s24 }
  0x15   :  { %p161_p9 = scmp.lt.u32.totalorder %s157_s27, %s264_s1 }
  0x17   :  { %p163_p10 = pnand %p161_p9, %p158_p8 }
  0x19   :  { %166 = shalt.err (!%p163_p10)
}
  0x1a   :  { %s167_s4 = scalar_lea.vmem %s36_s24, 256  ;;  %p172_p12 = scmp.lt.s32.totalorder %s36_s24, %s36_s24 }
  0x1b   :  { %p168_p11 = scmp.ne.s32.totalorder %s36_s24, %s167_s4  ;;  %p173_p13 = scmp.lt.s32.totalorder %s167_s4, %s167_s4 }
  0x1d   :  { %p174_p0 = por %p173_p13, %p172_p12 }
  0x1f   :  { %p175_p1 = pnand %p174_p0, %p168_p11 }
  0x21   :  { %178 = shalt.err (!%p175_p1)
}
  0x22   :  { %41 = dma.hbm_to_vmem [thread:$0]  %s264_s1, 256, %s36_s24, [#allocation6], %s208_s19, %s208_s19, %s209_s20  }
  0x23   :  { %201 = dma.done.wait [#allocation3], 256  }
  0x24   :  { %202 = vsyncadd [#allocation3], 4294967040 }
  0x25   :  { %203 = dma.done.wait [#allocation6], 256  }
  0x26   :  { %204 = vsyncadd [#allocation6], 4294967040  ;;  %v57_v0 = vld [vmem:[#allocation2] sm:$0xff]  ;;  %v58_v1 = vld [vmem:[#allocation2 + $0x8] sm:$0xff]  ;;  %s211_s1 = smov [#allocation7]  }
  0x27   :  { %v67_v2 = vand.u32 2147483647, %v57_v0  ;;  %v68_v3 = vand.u32 2147483647, %v58_v1  ;;  %v59_v14 = vld [vmem:[#allocation5] sm:$0xff]  ;;  %v60_v15 = vld [vmem:[#allocation5 + $0x8] sm:$0xff] }
  0x28   :  { %v61_v17 = vmax.f32 %v57_v0, 0.0  ;;  %v63_v18 = vmul.f32 %v59_v14, %v57_v0  ;;  %v62_v21 = vmax.f32 %v58_v1, 0.0  ;;  %v64_v22 = vmul.f32 %v60_v15, %v58_v1  ;;  %s111_s6 = sshll.u32 %s211_s1, 4  ;;  %s112_s6 = int_to_ptr.vmem [resolvable:$true] %s111_s6 }
  0x29   :  { %v69_v4 = vsub.f32 0.0, %v67_v2  ;;  %v70_v5 = vsub.f32 0.0, %v68_v3  ;;  %s179_s7 = scalar_lea.vmem %s112_s6, 128  ;;  %p184_p3 = scmp.lt.s32.totalorder %s112_s6, %s112_s6 }
  0x2a   :  { %v65_v26 = vsub.f32 %v61_v17, %v63_v18  ;;  %v66_v29 = vsub.f32 %v62_v21, %v64_v22  ;;  %p180_p2 = scmp.ne.s32.totalorder %s112_s6, %s179_s7  ;;  %p185_p4 = scmp.lt.s32.totalorder %s179_s7, %s179_s7 }
  0x2b   :  { %v71_v6 = vmul.f32 1.442695, %v69_v4  ;;  %v73_v7 = vmul.f32 1.442695, %v70_v5 }
  0x2c   :  { %p186_p5 = por %p185_p4, %p184_p3 }
  0x2d   :  { %127 = vpow2.f32 %v71_v6 }
  0x2e   :  { %129 = vpow2.f32 %v73_v7  ;;  %p187_p6 = pnand %p186_p5, %p180_p2 }
  0x37   :  { %v128_v8 = vpop.eup %127 }
  0x38   :  { %v130_v9 = vpop.eup %129  ;;  %v75_v10 = vadd.f32 1.0, %v128_v8  ;;  %v78_v12 = vmul.f32 -0.5, %v128_v8  ;;  %v81_v19 = vand.u32 2147483647, %v128_v8 }
  0x39   :  { %v84_v11 = vadd.f32 1.0, %v130_v9  ;;  %v87_v13 = vmul.f32 -0.5, %v130_v9  ;;  %v90_v23 = vand.u32 2147483647, %v130_v9 }
  0x3a   :  { %131 = vlog2.f32 %v75_v10  ;;  %v79_v16 = vadd.f32 1.0, %v78_v12  ;;  %vm82_vm0 = vcmp.lt.f32.partialorder %v81_v19, 0.0004427343 }
  0x3b   :  { %133 = vlog2.f32 %v84_v11  ;;  %v88_v20 = vadd.f32 1.0, %v87_v13  ;;  %vm91_vm1 = vcmp.lt.f32.partialorder %v90_v23, 0.0004427343 }
  0x3c   :  { %v80_v24 = vmul.f32 %v128_v8, %v79_v16 }
  0x3d   :  { %v89_v27 = vmul.f32 %v130_v9, %v88_v20 }
  0x44   :  { %v132_v25 = vpop.eup %131 }
  0x45   :  { %v134_v28 = vpop.eup %133  ;;  %v77_v30 = vmul.f32 0.6931472, %v132_v25 }
  0x46   :  { %v86_v31 = vmul.f32 0.6931472, %v134_v28 }
  0x47   :  { %v83_v32 = vsel %vm82_vm0, %v80_v24, %v77_v30 }
  0x48   :  { %v92_v33 = vsel %vm91_vm1, %v89_v27, %v86_v31  ;;  %v93_v34 = vadd.f32 %v83_v32, %v65_v26 }
  0x49   :  { %v94_v35 = vadd.f32 %v92_v33, %v66_v29 }
  0x4a   :  { %v95_v36 = vmul.f32 %v93_v34, %v59_v14 }
  0x4b   :  { %v96_v37 = vmul.f32 %v94_v35, %v60_v15 }
  0x4c   :  { %v97_v38 = vmul.f32 2.0, %v95_v36 }
  0x4d   :  { %v98_v39 = vmul.f32 2.0, %v96_v37 }
  0x4e   :  { %v99_v40 = vadd.f32 %v97_v38, %v93_v34 }
  0x4f   :  { %v100_v41 = vadd.f32 %v98_v39, %v94_v35 }
  0x51   :  { %v102_v42 = vadd.f32 %v100_v41, %v99_v40 }
  0x53   :  { %104 = vst [vmem:[#allocation7] sm:$0xff] %v102_v42 }
  0x54   :  { %190 = shalt.err (!%p187_p6)
}
  0x55   :  { %s191_s10 = scalar_lea.hbm %s265_s2, 128 }
  0x56   :  { %p192_p7 = scmp.ne.s32.totalorder %s265_s2, %s191_s10  ;;  %p195_p8 = scmp.lt.u32.totalorder %s191_s10, %s265_s2 }
  0x58   :  { %p197_p9 = pnand %p195_p8, %p192_p7 }
  0x5a   :  { %200 = shalt.err (!%p197_p9)
}
  0x5b   :  { %114 = dma.vmem_to_hbm [thread:$0]  %s112_s6, 128, %s265_s2, [#allocation4]  }
  0x5c   :  { %205 = dma.done.wait [#allocation4], 128  }
  0x5d   :  { %206 = vsyncadd [#allocation4], 4294967168 }
  0x5e   :  { %118 = vsyncpa [#allocation3], 1 }
  0x5f   :  { %119 = vsyncpa [#allocation6], 1 }
  0x60   :  { %120 = vsyncpa [#allocation4], 1 }

</bundles_post_ra>
